<compile_context>
chip_gen: v7x
topology: tpu7x:2x2x1
jax: 0.10.0
libtpu: 0.0.40
codegen_flags: <defaults>
</compile_context>

<pallas_src>
import jax
import jax.numpy as jnp
from jax.experimental import pallas as pl
from jax.experimental.pallas import tpu as pltpu


# ---------------------------------------------------------------------------
# Pass 1: 1x1 conv (split weights) + in-register sigmoid + BN partial sums.
# ---------------------------------------------------------------------------
def _conv_stats_kernel(a_ref, b_ref, wa_ref, wb_ref, bias_ref,
                       x1_ref, s_ref, ss_ref):
    ti = pl.program_id(2)
    a = a_ref[0]                                              # (C_map, R_tile)
    bm = b_ref[0]                                             # (C_map, R_tile)
    x1 = (jnp.dot(wa_ref[...], a, preferred_element_type=jnp.float32)
          + jnp.dot(wb_ref[...], bm, preferred_element_type=jnp.float32)
          + bias_ref[...])                                    # (Cout, R_tile)
    psi = jax.nn.sigmoid(x1)                                  # EUP; not stored
    x1_ref[0] = x1

    @pl.when(ti == 0)
    def _():
        s_ref[...] = jnp.zeros_like(s_ref)
        ss_ref[...] = jnp.zeros_like(ss_ref)

    # Shifted moments around 0.5 (sigmoid's center): avoids catastrophic
    # cancellation in E[psi^2] - E[psi]^2 for tightly clustered activations.
    d = psi - 0.5
    s_ref[0] += jnp.sum(d, axis=1, keepdims=True)             # (Cout, 1)
    ss_ref[0] += jnp.sum(d * d, axis=1, keepdims=True)        # (Cout, 1)


# ---------------------------------------------------------------------------
# Pass 2: recompute sigmoid(x1), apply folded BN affine, multiply by x1.
# Runs on the (N*Cout, HW) flattened view -> full sublanes even for Cout < 8.
# ---------------------------------------------------------------------------
def _norm_mul_kernel(x1_ref, scale_ref, shift_ref, out_ref):
    x1 = x1_ref[...]                                          # (S_tile, R_tile)
    psi = jax.nn.sigmoid(x1)
    out_ref[...] = x1 * (psi * scale_ref[...] + shift_ref[...])


# ---------------------------------------------------------------------------
# VMEM-budget helpers.
# ---------------------------------------------------------------------------
def _physical_vmem_bytes():
    try:
        return int(pltpu.get_tpu_info().vmem_capacity_bytes)
    except Exception:
        return 64 * 1024 * 1024     # conservative: v7x physical VMEM


def _pick_lane_tile(hw, cap_lanes):
    """Largest lane tile: whole hw if it fits, else the largest multiple-of-128
    divisor of hw under the VMEM-derived lane cap."""
    cap = max(int(cap_lanes), 128)
    if hw <= cap:
        return hw
    t = (cap // 128) * 128
    while t >= 128:
        if hw % t == 0:
            return t
        t -= 128
    # TODO(synk): no 128-aligned divisor of hw fits the budget; fall back to
    # the whole row (only reachable for exotic odd H*W with huge channels).
    return hw


def _pick_sublane_tile(nc, cap=1024):
    if nc <= cap:
        return nc
    t = (cap // 8) * 8
    while t >= 8:
        if nc % t == 0:
            return t
        t -= 8
    return nc


# ---------------------------------------------------------------------------
# Forward.
# ---------------------------------------------------------------------------
def asm_forward(map_1_fm, map_2_fm, w, b, gamma, beta, *, eps=1e-5):
    """map_1_fm / map_2_fm: (N, C_map, H, W) f32.  w: (Cout, 2*C_map, 1, 1),
    b / gamma / beta: (Cout,)."""
    N, C_map, H, W = map_1_fm.shape
    Cout, Cin = w.shape[0], w.shape[1]
    assert Cin == 2 * C_map
    HW = H * W

    # Generation-aware VMEM budgeting (v5e/v6e: 128 MiB phys; v7x: 64 MiB).
    phys_vmem = _physical_vmem_bytes()
    vmem_limit = min(int(phys_vmem * 0.75), 96 * 1024 * 1024)
    block_budget = int(vmem_limit * 0.80)         # headroom for weights/scratch

    # Pass-1 per-lane bytes: (2*C_map in + Cout out) * 4 B * 2 (double buffer).
    lanes_cap_1 = block_budget // (8 * (2 * C_map + Cout))
    R_tile = _pick_lane_tile(HW, lanes_cap_1)
    T = HW // R_tile
    # v7x megacore: if N alone can't fill two TensorCores, split the spatial
    # axis into a parallel outer part; each (n, tp) owns its own stats block,
    # so the inner axis can stay "arbitrary" (accumulation remains correct).
    t_par = 2 if (N % 2 == 1 and T % 2 == 0) else 1
    T_in = T // t_par

    # Channel-major, lane-dense layout straight from NCHW (pure reshapes).
    a = map_1_fm.reshape(N, C_map, HW)
    bm = map_2_fm.reshape(N, C_map, HW)
    w2d = w.reshape(Cout, Cin)
    wa = w2d[:, :C_map]                                       # (Cout, C_map)
    wb = w2d[:, C_map:]                                       # (Cout, C_map)
    bias = b.reshape(Cout, 1)

    x1, s, ss = pl.pallas_call(
        _conv_stats_kernel,
        out_shape=(
            jax.ShapeDtypeStruct((N, Cout, HW), jnp.float32),
            jax.ShapeDtypeStruct((N * t_par, Cout, 1), jnp.float32),
            jax.ShapeDtypeStruct((N * t_par, Cout, 1), jnp.float32),
        ),
        grid_spec=pltpu.PrefetchScalarGridSpec(
            num_scalar_prefetch=0,
            grid=(N, t_par, T_in),
            in_specs=[
                pl.BlockSpec((1, C_map, R_tile),
                             lambda n, tp, ti: (n, 0, tp * T_in + ti)),
                pl.BlockSpec((1, C_map, R_tile),
                             lambda n, tp, ti: (n, 0, tp * T_in + ti)),
                pl.BlockSpec((Cout, C_map), lambda n, tp, ti: (0, 0)),
                pl.BlockSpec((Cout, C_map), lambda n, tp, ti: (0, 0)),
                pl.BlockSpec((Cout, 1), lambda n, tp, ti: (0, 0)),
            ],
            out_specs=[
                pl.BlockSpec((1, Cout, R_tile),
                             lambda n, tp, ti: (n, 0, tp * T_in + ti)),
                pl.BlockSpec((1, Cout, 1),
                             lambda n, tp, ti: (n * t_par + tp, 0, 0)),
                pl.BlockSpec((1, Cout, 1),
                             lambda n, tp, ti: (n * t_par + tp, 0, 0)),
            ],
        ),
        compiler_params=pltpu.CompilerParams(
            dimension_semantics=("parallel", "parallel", "arbitrary"),
            vmem_limit_bytes=vmem_limit),
    )(a, bm, wa, wb, bias)

    # Tiny per-channel BN finalize (training-mode, biased variance), folded
    # into one scale/shift per channel.  Shifted moments: psi = 0.5 + d.
    count = jnp.float32(N * HW)
    mean_d = jnp.sum(s, axis=0)[:, 0] / count                 # (Cout,)
    mean_dd = jnp.sum(ss, axis=0)[:, 0] / count
    mean = 0.5 + mean_d
    var = mean_dd - mean_d * mean_d
    inv_std = jax.lax.rsqrt(var + eps)
    scale_v = gamma * inv_std
    shift_v = beta - mean * scale_v
    # TODO(synk): BatchNorm2d running_mean/running_var bookkeeping is not
    # modeled (it does not affect the training-mode forward output).

    # Pass 2 on the flattened (N*Cout, HW) view; output aliases the x1 buffer.
    NC = N * Cout
    x1_flat = x1.reshape(NC, HW)
    scale_rows = jnp.broadcast_to(scale_v[None, :], (N, Cout)).reshape(NC, 1)
    shift_rows = jnp.broadcast_to(shift_v[None, :], (N, Cout)).reshape(NC, 1)

    S_tile = _pick_sublane_tile(NC)
    lanes_cap_2 = block_budget // (16 * S_tile)   # x1 in + out, double buffered
    R2_tile = _pick_lane_tile(HW, lanes_cap_2)

    out_flat = pl.pallas_call(
        _norm_mul_kernel,
        out_shape=jax.ShapeDtypeStruct((NC, HW), jnp.float32),
        grid_spec=pltpu.PrefetchScalarGridSpec(
            num_scalar_prefetch=0,
            grid=(NC // S_tile, HW // R2_tile),
            in_specs=[
                pl.BlockSpec((S_tile, R2_tile), lambda si, ti: (si, ti)),
                pl.BlockSpec((S_tile, 1), lambda si, ti: (si, 0)),
                pl.BlockSpec((S_tile, 1), lambda si, ti: (si, 0)),
            ],
            out_specs=pl.BlockSpec((S_tile, R2_tile), lambda si, ti: (si, ti)),
        ),
        input_output_aliases={0: 0},              # x1 is dead after this pass
        compiler_params=pltpu.CompilerParams(
            dimension_semantics=("parallel", "parallel"),
            vmem_limit_bytes=vmem_limit),
    )(x1_flat, scale_rows, shift_rows)

    return out_flat.reshape(N, Cout, H, W)


def asm_reference(map_1_fm, map_2_fm, w, b, gamma, beta, eps=1e-5):
    """Pure-JAX reference mirroring the PyTorch forward (training-mode BN)."""
    x = jnp.concatenate([map_1_fm, map_2_fm], axis=1)
    x1 = jnp.einsum("nchw,oc->nohw", x, w.reshape(w.shape[0], w.shape[1]))
    x1 = x1 + b.reshape(1, -1, 1, 1)
    psi = jax.nn.sigmoid(x1)
    mean = psi.mean(axis=(0, 2, 3), keepdims=True)
    var = psi.var(axis=(0, 2, 3), keepdims=True)      # biased, like BN train
    psi_n = (psi - mean) / jnp.sqrt(var + eps)
    psi_n = psi_n * gamma.reshape(1, -1, 1, 1) + beta.reshape(1, -1, 1, 1)
    return x1 * psi_n


if __name__ == "__main__":
    # Small shapes: batch=2, each input map has 4 channels -> F_ip=8, F_int=4,
    # spatial 16x16.
    N, C_map, H, W = 2, 4, 16, 16
    F_ip, F_int = 2 * C_map, 4

    key = jax.random.PRNGKey(0)
    k1, k2, k3, k4 = jax.random.split(key, 4)
    map_1_fm = jax.random.normal(k1, (N, C_map, H, W), dtype=jnp.float32)
    map_2_fm = jax.random.normal(k2, (N, C_map, H, W), dtype=jnp.float32)

    # Conv2d 1x1 weight/bias; BN gamma=1, beta=0 (PyTorch defaults).
    w = jax.random.normal(k3, (F_int, F_ip, 1, 1), dtype=jnp.float32) * 0.1
    b = jax.random.normal(k4, (F_int,), dtype=jnp.float32) * 0.1
    gamma = jnp.ones((F_int,), dtype=jnp.float32)
    beta = jnp.zeros((F_int,), dtype=jnp.float32)

    fwd = jax.jit(asm_forward)
    out = fwd(map_1_fm, map_2_fm, w, b, gamma, beta)
    out = jax.block_until_ready(out)

    ref = asm_reference(map_1_fm, map_2_fm, w, b, gamma, beta)
    assert out.shape == (N, F_int, H, W)
    assert jnp.allclose(out, ref, atol=1e-4, rtol=1e-4), "mismatch vs reference"

    print("KERNEL_OK")
</pallas_src>

<mosaic_0001>
module attributes {stable_mosaic.version = 11 : i64} {
  func.func @_conv_stats_kernel(%arg0: i32, %arg1: i32, %arg2: i32, %arg3: memref<1x4x256xf32, #tpu.memory_space<vmem>>, %arg4: memref<1x4x256xf32, #tpu.memory_space<vmem>>, %arg5: memref<4x4xf32, #tpu.memory_space<vmem>>, %arg6: memref<4x4xf32, #tpu.memory_space<vmem>>, %arg7: memref<4x1xf32, #tpu.memory_space<vmem>>, %arg8: memref<1x4x256xf32, #tpu.memory_space<vmem>>, %arg9: memref<1x4x1xf32, #tpu.memory_space<vmem>>, %arg10: memref<1x4x1xf32, #tpu.memory_space<vmem>>) attributes {dimension_semantics = [#tpu.dimension_semantics<parallel>, #tpu.dimension_semantics<parallel>, #tpu.dimension_semantics<arbitrary>], iteration_bounds = array<i64: 2, 1, 1>, scalar_prefetch = 0 : i64, scratch_operands = 0 : i64, tpu.core_type = #tpu.core_type<tc>, window_params = [{transform_indices = @transform_0, window_bounds = array<i64: 1, 4, 256>}, {transform_indices = @transform_1, window_bounds = array<i64: 1, 4, 256>}, {pipeline_mode = #tpu.pipeline_mode<synchronous>, transform_indices = @transform_2, window_bounds = array<i64: 4, 4>}, {pipeline_mode = #tpu.pipeline_mode<synchronous>, transform_indices = @transform_3, window_bounds = array<i64: 4, 4>}, {pipeline_mode = #tpu.pipeline_mode<synchronous>, transform_indices = @transform_4, window_bounds = array<i64: 4, 1>}, {transform_indices = @transform_5, window_bounds = array<i64: 1, 4, 256>}, {transform_indices = @transform_6, window_bounds = array<i64: 1, 4, 1>}, {transform_indices = @transform_7, window_bounds = array<i64: 1, 4, 1>}]} {
    %c0 = arith.constant 0 : index
    %c0_0 = arith.constant 0 : index
    %c0_1 = arith.constant 0 : index
    %0 = vector.load %arg3[%c0, %c0_0, %c0_1] : memref<1x4x256xf32, #tpu.memory_space<vmem>>, vector<1x4x256xf32>
    %1 = vector.shape_cast %0 : vector<1x4x256xf32> to vector<4x256xf32>
    %c0_2 = arith.constant 0 : index
    %c0_3 = arith.constant 0 : index
    %c0_4 = arith.constant 0 : index
    %2 = vector.load %arg4[%c0_2, %c0_3, %c0_4] : memref<1x4x256xf32, #tpu.memory_space<vmem>>, vector<1x4x256xf32>
    %3 = vector.shape_cast %2 : vector<1x4x256xf32> to vector<4x256xf32>
    %c0_5 = arith.constant 0 : index
    %c0_6 = arith.constant 0 : index
    %4 = vector.load %arg5[%c0_5, %c0_6] : memref<4x4xf32, #tpu.memory_space<vmem>>, vector<4x4xf32>
    %cst = arith.constant dense<0.000000e+00> : vector<4x256xf32>
    %5 = tpu.matmul %4, %1, %cst {dimension_numbers = #tpu.dot_dimension_numbers<[1], [0], [0], [1], [0, 0, 1, 1], [], []>} : vector<4x4xf32>, vector<4x256xf32>, vector<4x256xf32> -> vector<4x256xf32>
    %c0_7 = arith.constant 0 : index
    %c0_8 = arith.constant 0 : index
    %6 = vector.load %arg6[%c0_7, %c0_8] : memref<4x4xf32, #tpu.memory_space<vmem>>, vector<4x4xf32>
    %cst_9 = arith.constant dense<0.000000e+00> : vector<4x256xf32>
    %7 = tpu.matmul %6, %3, %cst_9 {dimension_numbers = #tpu.dot_dimension_numbers<[1], [0], [0], [1], [0, 0, 1, 1], [], []>} : vector<4x4xf32>, vector<4x256xf32>, vector<4x256xf32> -> vector<4x256xf32>
    %8 = arith.addf %5, %7 : vector<4x256xf32>
    %c0_10 = arith.constant 0 : index
    %c0_11 = arith.constant 0 : index
    %9 = vector.load %arg7[%c0_10, %c0_11] : memref<4x1xf32, #tpu.memory_space<vmem>>, vector<4x1xf32>
    %10 = vector.broadcast %9 : vector<4x1xf32> to vector<4x256xf32>
    %11 = arith.addf %8, %10 : vector<4x256xf32>
    %12 = arith.negf %11 : vector<4x256xf32>
    %13 = math.exp %12 : vector<4x256xf32>
    %cst_12 = arith.constant 1.000000e+00 : f32
    %14 = vector.broadcast %cst_12 : f32 to vector<4x256xf32>
    %15 = arith.addf %14, %13 : vector<4x256xf32>
    %16 = arith.divf %14, %15 : vector<4x256xf32>
    %c0_13 = arith.constant 0 : index
    %c0_14 = arith.constant 0 : index
    %c0_15 = arith.constant 0 : index
    %17 = vector.load %arg8[%c0_13, %c0_14, %c0_15] : memref<1x4x256xf32, #tpu.memory_space<vmem>>, vector<1x4x256xf32>
    %18 = vector.shape_cast %17 : vector<1x4x256xf32> to vector<4x256xf32>
    %19 = vector.shape_cast %11 : vector<4x256xf32> to vector<1x4x256xf32>
    tpu.vector_store %arg8[%c0_13, %c0_14, %c0_15], %19 {strides = array<i32>} : memref<1x4x256xf32, #tpu.memory_space<vmem>>, vector<1x4x256xf32>,
    %c0_i32 = arith.constant 0 : i32
    %20 = arith.cmpi eq, %arg2, %c0_i32 : i32
    %21 = arith.extui %20 : i1 to i32
    %c0_i32_16 = arith.constant 0 : i32
    %22 = arith.cmpi ne, %21, %c0_i32_16 : i32
    scf.if %22 {
      %cst_32 = arith.constant 0.000000e+00 : f32
      %42 = vector.broadcast %cst_32 : f32 to vector<1x4x1xf32>
      %c0_33 = arith.constant 0 : index
      %c0_34 = arith.constant 0 : index
      %c0_35 = arith.constant 0 : index
      %43 = vector.load %arg9[%c0_33, %c0_34, %c0_35] : memref<1x4x1xf32, #tpu.memory_space<vmem>>, vector<1x4x1xf32>
      tpu.vector_store %arg9[%c0_33, %c0_34, %c0_35], %42 {strides = array<i32>} : memref<1x4x1xf32, #tpu.memory_space<vmem>>, vector<1x4x1xf32>,
      %cst_36 = arith.constant 0.000000e+00 : f32
      %44 = vector.broadcast %cst_36 : f32 to vector<1x4x1xf32>
      %c0_37 = arith.constant 0 : index
      %c0_38 = arith.constant 0 : index
      %c0_39 = arith.constant 0 : index
      %45 = vector.load %arg10[%c0_37, %c0_38, %c0_39] : memref<1x4x1xf32, #tpu.memory_space<vmem>>, vector<1x4x1xf32>
      tpu.vector_store %arg10[%c0_37, %c0_38, %c0_39], %44 {strides = array<i32>} : memref<1x4x1xf32, #tpu.memory_space<vmem>>, vector<1x4x1xf32>,
    } else {
    }
    %cst_17 = arith.constant 5.000000e-01 : f32
    %23 = vector.broadcast %cst_17 : f32 to vector<4x256xf32>
    %24 = arith.subf %16, %23 : vector<4x256xf32>
    %c0_18 = arith.constant 0 : index
    %c0_19 = arith.constant 0 : index
    %c0_20 = arith.constant 0 : index
    %25 = vector.load %arg9[%c0_18, %c0_19, %c0_20] : memref<1x4x1xf32, #tpu.memory_space<vmem>>, vector<1x4x1xf32>
    %26 = vector.shape_cast %25 : vector<1x4x1xf32> to vector<4x1xf32>
    %cst_21 = arith.constant dense<0.000000e+00> : vector<4xf32>
    %27 = vector.multi_reduction <add>, %24, %cst_21 [1] : vector<4x256xf32> to vector<4xf32>
    %28 = vector.shape_cast %27 : vector<4xf32> to vector<4x1xf32>
    %29 = arith.addf %26, %28 : vector<4x1xf32>
    %c0_22 = arith.constant 0 : index
    %c0_23 = arith.constant 0 : index
    %c0_24 = arith.constant 0 : index
    %30 = vector.load %arg9[%c0_22, %c0_23, %c0_24] : memref<1x4x1xf32, #tpu.memory_space<vmem>>, vector<1x4x1xf32>
    %31 = vector.shape_cast %30 : vector<1x4x1xf32> to vector<4x1xf32>
    %32 = vector.shape_cast %29 : vector<4x1xf32> to vector<1x4x1xf32>
    tpu.vector_store %arg9[%c0_22, %c0_23, %c0_24], %32 {strides = array<i32>} : memref<1x4x1xf32, #tpu.memory_space<vmem>>, vector<1x4x1xf32>,
    %c0_25 = arith.constant 0 : index
    %c0_26 = arith.constant 0 : index
    %c0_27 = arith.constant 0 : index
    %33 = vector.load %arg10[%c0_25, %c0_26, %c0_27] : memref<1x4x1xf32, #tpu.memory_space<vmem>>, vector<1x4x1xf32>
    %34 = vector.shape_cast %33 : vector<1x4x1xf32> to vector<4x1xf32>
    %35 = arith.mulf %24, %24 : vector<4x256xf32>
    %cst_28 = arith.constant dense<0.000000e+00> : vector<4xf32>
    %36 = vector.multi_reduction <add>, %35, %cst_28 [1] : vector<4x256xf32> to vector<4xf32>
    %37 = vector.shape_cast %36 : vector<4xf32> to vector<4x1xf32>
    %38 = arith.addf %34, %37 : vector<4x1xf32>
    %c0_29 = arith.constant 0 : index
    %c0_30 = arith.constant 0 : index
    %c0_31 = arith.constant 0 : index
    %39 = vector.load %arg10[%c0_29, %c0_30, %c0_31] : memref<1x4x1xf32, #tpu.memory_space<vmem>>, vector<1x4x1xf32>
    %40 = vector.shape_cast %39 : vector<1x4x1xf32> to vector<4x1xf32>
    %41 = vector.shape_cast %38 : vector<4x1xf32> to vector<1x4x1xf32>
    tpu.vector_store %arg10[%c0_29, %c0_30, %c0_31], %41 {strides = array<i32>} : memref<1x4x1xf32, #tpu.memory_space<vmem>>, vector<1x4x1xf32>,
    return
  }
  func.func @transform_0(%arg0: i32, %arg1: i32, %arg2: i32) -> (i32, i32, i32) {
    %c1_i32 = arith.constant 1 : i32
    %0 = arith.muli %arg1, %c1_i32 : i32
    %1 = arith.addi %0, %arg2 : i32
    %c0_i32 = arith.constant 0 : i32
    %c0_i32_0 = arith.constant 0 : i32
    return %arg0, %c0_i32, %1 : i32, i32, i32
  }
  func.func @transform_1(%arg0: i32, %arg1: i32, %arg2: i32) -> (i32, i32, i32) {
    %c1_i32 = arith.constant 1 : i32
    %0 = arith.muli %arg1, %c1_i32 : i32
    %1 = arith.addi %0, %arg2 : i32
    %c0_i32 = arith.constant 0 : i32
    %c0_i32_0 = arith.constant 0 : i32
    return %arg0, %c0_i32, %1 : i32, i32, i32
  }
  func.func @transform_2(%arg0: i32, %arg1: i32, %arg2: i32) -> (i32, i32) {
    %c0_i32 = arith.constant 0 : i32
    %c0_i32_0 = arith.constant 0 : i32
    %c0_i32_1 = arith.constant 0 : i32
    return %c0_i32, %c0_i32_0 : i32, i32
  }
  func.func @transform_3(%arg0: i32, %arg1: i32, %arg2: i32) -> (i32, i32) {
    %c0_i32 = arith.constant 0 : i32
    %c0_i32_0 = arith.constant 0 : i32
    %c0_i32_1 = arith.constant 0 : i32
    return %c0_i32, %c0_i32_0 : i32, i32
  }
  func.func @transform_4(%arg0: i32, %arg1: i32, %arg2: i32) -> (i32, i32) {
    %c0_i32 = arith.constant 0 : i32
    %c0_i32_0 = arith.constant 0 : i32
    %c0_i32_1 = arith.constant 0 : i32
    return %c0_i32, %c0_i32_0 : i32, i32
  }
  func.func @transform_5(%arg0: i32, %arg1: i32, %arg2: i32) -> (i32, i32, i32) {
    %c1_i32 = arith.constant 1 : i32
    %0 = arith.muli %arg1, %c1_i32 : i32
    %1 = arith.addi %0, %arg2 : i32
    %c0_i32 = arith.constant 0 : i32
    %c0_i32_0 = arith.constant 0 : i32
    return %arg0, %c0_i32, %1 : i32, i32, i32
  }
  func.func @transform_6(%arg0: i32, %arg1: i32, %arg2: i32) -> (i32, i32, i32) {
    %c1_i32 = arith.constant 1 : i32
    %0 = arith.muli %arg0, %c1_i32 : i32
    %1 = arith.addi %0, %arg1 : i32
    %c0_i32 = arith.constant 0 : i32
    %c0_i32_0 = arith.constant 0 : i32
    %c0_i32_1 = arith.constant 0 : i32
    return %1, %c0_i32, %c0_i32_0 : i32, i32, i32
  }
  func.func @transform_7(%arg0: i32, %arg1: i32, %arg2: i32) -> (i32, i32, i32) {
    %c1_i32 = arith.constant 1 : i32
    %0 = arith.muli %arg0, %c1_i32 : i32
    %1 = arith.addi %0, %arg1 : i32
    %c0_i32 = arith.constant 0 : i32
    %c0_i32_0 = arith.constant 0 : i32
    %c0_i32_1 = arith.constant 0 : i32
    return %1, %c0_i32, %c0_i32_0 : i32, i32, i32
  }
}

module attributes {stable_mosaic.version = 11 : i64} {
  func.func @_norm_mul_kernel(%arg0: i32, %arg1: i32, %arg2: memref<8x256xf32, #tpu.memory_space<vmem>>, %arg3: memref<8x1xf32, #tpu.memory_space<vmem>>, %arg4: memref<8x1xf32, #tpu.memory_space<vmem>>, %arg5: memref<8x256xf32, #tpu.memory_space<vmem>>) attributes {dimension_semantics = [#tpu.dimension_semantics<parallel>, #tpu.dimension_semantics<parallel>], iteration_bounds = array<i64: 1, 1>, scalar_prefetch = 0 : i64, scratch_operands = 0 : i64, tpu.core_type = #tpu.core_type<tc>, window_params = [{transform_indices = @transform_0, window_bounds = array<i64: 8, 256>}, {transform_indices = @transform_1, window_bounds = array<i64: 8, 1>}, {transform_indices = @transform_2, window_bounds = array<i64: 8, 1>}, {transform_indices = @transform_3, window_bounds = array<i64: 8, 256>}]} {
    %c0 = arith.constant 0 : index
    %c0_0 = arith.constant 0 : index
    %0 = vector.load %arg2[%c0, %c0_0] : memref<8x256xf32, #tpu.memory_space<vmem>>, vector<8x256xf32>
    %1 = arith.negf %0 : vector<8x256xf32>
    %2 = math.exp %1 : vector<8x256xf32>
    %cst = arith.constant 1.000000e+00 : f32
    %3 = vector.broadcast %cst : f32 to vector<8x256xf32>
    %4 = arith.addf %3, %2 : vector<8x256xf32>
    %5 = arith.divf %3, %4 : vector<8x256xf32>
    %c0_1 = arith.constant 0 : index
    %c0_2 = arith.constant 0 : index
    %6 = vector.load %arg3[%c0_1, %c0_2] : memref<8x1xf32, #tpu.memory_space<vmem>>, vector<8x1xf32>
    %7 = vector.broadcast %6 : vector<8x1xf32> to vector<8x256xf32>
    %8 = arith.mulf %5, %7 : vector<8x256xf32>
    %c0_3 = arith.constant 0 : index
    %c0_4 = arith.constant 0 : index
    %9 = vector.load %arg4[%c0_3, %c0_4] : memref<8x1xf32, #tpu.memory_space<vmem>>, vector<8x1xf32>
    %10 = vector.broadcast %9 : vector<8x1xf32> to vector<8x256xf32>
    %11 = arith.addf %8, %10 : vector<8x256xf32>
    %12 = arith.mulf %0, %11 : vector<8x256xf32>
    %c0_5 = arith.constant 0 : index
    %c0_6 = arith.constant 0 : index
    %13 = vector.load %arg5[%c0_5, %c0_6] : memref<8x256xf32, #tpu.memory_space<vmem>>, vector<8x256xf32>
    tpu.vector_store %arg5[%c0_5, %c0_6], %12 {strides = array<i32>} : memref<8x256xf32, #tpu.memory_space<vmem>>, vector<8x256xf32>,
    return
  }
  func.func @transform_0(%arg0: i32, %arg1: i32) -> (i32, i32) {
    %c0_i32 = arith.constant 0 : i32
    return %arg0, %arg1 : i32, i32
  }
  func.func @transform_1(%arg0: i32, %arg1: i32) -> (i32, i32) {
    %c0_i32 = arith.constant 0 : i32
    %c0_i32_0 = arith.constant 0 : i32
    return %arg0, %c0_i32 : i32, i32
  }
  func.func @transform_2(%arg0: i32, %arg1: i32) -> (i32, i32) {
    %c0_i32 = arith.constant 0 : i32
    %c0_i32_0 = arith.constant 0 : i32
    return %arg0, %c0_i32 : i32, i32
  }
  func.func @transform_3(%arg0: i32, %arg1: i32) -> (i32, i32) {
    %c0_i32 = arith.constant 0 : i32
    return %arg0, %arg1 : i32, i32
  }
}

</mosaic_0001>

<bundles_post_ra>
// kernel: asm_forward.3
= control target key start
LH: loop header
LB: loop body
LE: loop exit
PB: predicated region body
PF: predicated region fallthrough
CT: control target
= control target key end

     0   :  { %v64_v0 = vmov 0   ;;  %s103_s1 = inlined_call_operand.vmem [shape: f32[8,1], index: 1, kind: input, shape index: {}]   ;;  %s104_s2 = inlined_call_operand.vmem [shape: f32[8,1], index: 2, kind: input, shape index: {}]   ;;  %s105_s0 = inlined_call_operand.vmem [shape: f32[8,256], index: 0, kind: input, shape index: {}, may-alias: {0,3}]   ;;  %s106_s3 = inlined_call_operand.vmem [shape: f32[8,256], index: 3, kind: output, shape index: {}, may-alias: {0,3}]  }
   0x1   :  { %55 = vset.pattern.permute.xlu0 %v64_v0  ;;  %v28_v1 = vld [vmem:[%s103_s1] sm:$0xff]  ;;  %v15_v4 = vld [vmem:[%s105_s0 + $0x8] sm:$0xff] }
   0x2   :  { %31 = vperm.xlu0 %55, %v28_v1   ;;  %v36_v2 = vld [vmem:[%s104_s2] sm:$0xff]  ;;  %v53_v6 = vmul.f32 -1.442695, %v15_v4 }
   0x3   :  { %v14_v3 = vld [vmem:[%s105_s0] sm:$0xff] }
   0x4   :  { %v52_v5 = vmul.f32 -1.442695, %v14_v3 }
   0x6   :  { %39 = vperm.xlu0 %55, %v36_v2   ;;  %56 = vpow2.f32 %v52_v5 }
   0x7   :  { %58 = vpow2.f32 %v53_v6 }
  0x10   :  { %v57_v7 = vpop.eup %56 }
  0x11   :  { %v59_v8 = vpop.eup %58  ;;  %v22_v9 = vadd.f32 1.0, %v57_v7 }
  0x12   :  { %v23_v10 = vadd.f32 1.0, %v59_v8 }
  0x13   :  { %60 = vrcp.f32 %v22_v9 }
  0x14   :  { %62 = vrcp.f32 %v23_v10 }
  0x1d   :  { %v61_v11 = vpop.eup %60 }
  0x1e   :  { %v63_v12 = vpop.eup %62 }
  0x81   :  { %v32_v13 = vpop.permute.xlu0 %31 }
  0x82   :  { %v34_v14 = vmul.f32 %v61_v11, %v32_v13  ;;  %v35_v15 = vmul.f32 %v63_v12, %v32_v13 }
  0x85   :  { %v40_v16 = vpop.permute.xlu0 %39 }
  0x86   :  { %v42_v17 = vadd.f32 %v40_v16, %v34_v14  ;;  %v43_v18 = vadd.f32 %v40_v16, %v35_v15 }
  0x88   :  { %v44_v19 = vmul.f32 %v42_v17, %v14_v3  ;;  %v45_v20 = vmul.f32 %v43_v18, %v15_v4 }
  0x8a   :  { %46 = vst [vmem:[%s106_s3] sm:$0xff] %v44_v19  ;;  %47 = vst [vmem:[%s106_s3 + $0x8] sm:$0xff] %v45_v20 }

// kernel: asm_forward.2
= control target key start
LH: loop header
LB: loop body
LE: loop exit
PB: predicated region body
PF: predicated region fallthrough
CT: control target
= control target key end

     0   :  { %s942_s24 = smov 0   ;;  %s944_s25 = smov 0   ;;  %s1027_s0 = inlined_call_operand.vmem [shape: f32[2,4,256], index: 0, kind: input, shape index: {}]   ;;  %s1028_s1 = inlined_call_operand.vmem [shape: f32[2,4,256], index: 1, kind: input, shape index: {}]   ;;  %s1029_s2 = inlined_call_operand.vmem [shape: f32[4,4], index: 2, kind: input, shape index: {}]   ;;  %s1030_s3 = inlined_call_operand.vmem [shape: f32[4,4], index: 3, kind: input, shape index: {}]   ;;  %s1031_s4 = inlined_call_operand.vmem [shape: f32[4,1], index: 4, kind: input, shape index: {}]   ;;  %s1032_s5 = inlined_call_operand.vmem [shape: f32[2,4,256], index: 5, kind: output, shape index: {0}]   ;;  %s1033_s6 = inlined_call_operand.vmem [shape: f32[2,4,1], index: 6, kind: output, shape index: {1}]   ;;  %s1034_s7 = inlined_call_operand.vmem [shape: f32[2,4,1], index: 7, kind: output, shape index: {2}]  }
   0x1   :  { %s946_s26 = smov 0  }
   0x2 LB: > { %s37_s27 = sadd.s32 1, %s894_s25  ;;  %p813_p0 = scmp.ge.s32.totalorder %s898_s26, 1  ;;  %s898_s26 = sphi %s946_s26, %s18_s26   ;;  %s894_s25 = sphi %s944_s25, %s1036_s25   ;;  %s890_s24 = sphi %s942_s24, %s1035_s24  }
   0x3   : > { %p39_p1 = scmp.ge.s32.totalorder %s37_s27, 2  ;;  %p301_p2 = scmp.lt.s32.totalorder %s898_s26, 3 }
   0x5   : > { %s1038_s27 = smov (%p39_p1, %s37_s27), 0  ;;  %p302_p3 = pnand %p813_p0, %p301_p2 }
   0x6   : > { %p365_p4 = scmp.lt.s32.totalorder (!%p302_p3), %s890_s24, 1  ;;  %v900_v0 = vmov (!%p302_p3), 0.0   ;;  %v577_v1 = vld [vmem:[%s1031_s4] sm:$0xf] (!%p302_p3)  ;;  %v901_v2 = vmov (!%p302_p3), 0   ;;  %vm421_vm0 = vcmask (!%p302_p3), 1043456  }
   0x7   : > { %305 = sbr.rel (%p302_p3) target bundleno = 418 (0x1a2), region = 40  ;;  %490 = vmatprep.mubr.f32.mxu1 (!%p302_p3), %v900_v0  ;;  %570 = vmatprep.mubr.f32.mxu0 (!%p302_p3), %v900_v0  ;;  %v414_v7 = vld [vmem:[%s1030_s3] sm:$0xf] (!%p302_p3)  ;;  %vm417_vm1 = vcmask (!%p302_p3), 31744   ;;  %vm606_vm2 = vcmask (!%p302_p3), 3072  }
   0x8   : > { %865 = vset.pattern.permute.xlu0 (!%p302_p3), %v901_v2  ;;  %v413_v8 = vld [vmem:[%s1029_s2] sm:$0xf] (!%p302_p3) }
   0x9   : > { %580 = vperm.xlu0 (!%p302_p3), %865, %v577_v1  }
   0xe   : > { %s1040_s24 = smov (!%p365_p4, %s890_s24), 1 }
   0xf   : > { %s968_s30 = sshll.u32 %s1040_s24, 3  ;;  %s820_s18 = sshll.u32 %s1040_s24, 2 }
  0x10   : > { %s384_s10 = scalar_lea.vmem %s1028_s1, %s968_s30  ;;  %s372_s13 = scalar_lea.vmem %s1027_s0, %s968_s30 }
  0x11   : > { %v412_v3 = vld [vmem:[%s384_s10] sm:$0xff]  ;;  %s994_s21 = scalar_lea.vmem %s1033_s6, %s820_s18  ;;  %s396_s28 = scalar_lea.vmem %s1032_s5, %s968_s30 }
  0x12   : > { %v411_v4 = vld [vmem:[%s372_s13] sm:$0xff]  ;;  %v416_v5 = vcombine.high %v412_v3, %v412_v3  ;;  %607 = vst.msk [vmem:[%s994_s21] sm:$0xf] %vm606_vm2, %v900_v0  ;;  %s409_s8 = scalar_lea.vmem %s1034_s7, %s820_s18 }
  0x13   : > { %v498_v6 = vcombine.high %v411_v4, %v411_v4  ;;  %608 = vst.msk [vmem:[%s409_s8] sm:$0xf] %vm606_vm2, %v900_v0 }
  0x14   : > { %822 = vmatprep.subr.msk.mxu1 %vm421_vm0, %v416_v5 }
  0x15   : > { %825 = vmatprep.subr.msk.mxu0 %vm421_vm0, %v498_v6  ;;  %823 = vmatpush1.msk.msra.mxu1 %vm421_vm0, %v412_v3 }
  0x16   : > { %826 = vmatpush1.msk.msra.mxu0 %vm421_vm0, %v411_v4  ;;  %824 = vmatmul.mubr.msk.f32.vlgmr.msra.gmra.mrb[0].mxu1 %vm417_vm1, %v414_v7 }
  0x17   : > { %827 = vmatmul.mubr.msk.f32.vlgmr.msra.gmra.mrb[0].mxu0 %vm417_vm1, %v413_v8 }
  0x19   : > { %v611_v37 = vld [vmem:[%s994_s21] sm:$0xf] }
  0x1a   : > { %v620_v39 = vld [vmem:[%s409_s8] sm:$0xf] }
  0x88   : > { %v581_v9 = vpop.permute.xlu0 %580 }
  0xe9   : > { %v492_v10 = vpop.f32.mrb[0].mxu1 }
  0xea   : > { %v572_v11 = vpop.f32.mrb[0].mxu0  ;;  %v494_v13 = vpop.f32.mrb[1].mxu1 }
  0xeb   : > { %v573_v12 = vadd.f32 %v572_v11, %v492_v10  ;;  %v574_v14 = vpop.f32.mrb[1].mxu0 }
  0xec   : > { %v575_v15 = vadd.f32 %v574_v14, %v494_v13 }
  0xed   : > { %v583_v16 = vadd.f32 %v581_v9, %v573_v12 }
  0xee   : > { %v584_v17 = vadd.f32 %v581_v9, %v575_v15 }
  0xef   : > { %v828_v18 = vmul.f32 -1.442695, %v583_v16 }
  0xf0   : > { %v829_v19 = vmul.f32 -1.442695, %v584_v17  ;;  %v599_v20 = vcombine.low %v583_v16, %v584_v17 }
  0xf1   : > { %868 = vpow2.f32 %v828_v18 }
  0xf2   : > { %870 = vpow2.f32 %v829_v19  ;;  %601 = vst [vmem:[%s396_s28] sm:$0xff] %v599_v20 }
  0xfb   : > { %v869_v21 = vpop.eup %868 }
  0xfc   : > { %v871_v22 = vpop.eup %870  ;;  %v591_v23 = vadd.f32 1.0, %v869_v21 }
  0xfd   : > { %v592_v24 = vadd.f32 1.0, %v871_v22 }
  0xfe   : > { %872 = vrcp.f32 %v591_v23 }
  0xff   : > { %874 = vrcp.f32 %v592_v24 }
 0x108   : > { %v873_v25 = vpop.eup %872 }
 0x109   : > { %v875_v26 = vpop.eup %874  ;;  %v830_v27 = vadd.f32 -0.5, %v873_v25 }
 0x10a   : > { %v831_v28 = vadd.f32 -0.5, %v875_v26 }
 0x10b   : > { %v612_v29 = vsel %vm421_vm0, %v830_v27, 0.0  ;;  %v621_v30 = vmul.f32 %v830_v27, %v830_v27 }
 0x10c   : > { %v613_v31 = vsel %vm421_vm0, %v831_v28, 0.0  ;;  %v622_v32 = vmul.f32 %v831_v28, %v831_v28 }
 0x10d   : > { %v614_v33 = vadd.f32 %v613_v31, %v612_v29  ;;  %v623_v34 = vsel %vm421_vm0, %v621_v30, 0.0 }
 0x10e   : > { %v624_v35 = vsel %vm421_vm0, %v622_v32, 0.0 }
 0x10f   : > { %615 = vadd.xlane.f32.xlu0 %v614_v33  ;;  %v625_v36 = vadd.f32 %v624_v35, %v623_v34 }
 0x111   : > { %626 = vadd.xlane.f32.xlu1 %v625_v36 }
 0x19c   : > { %v616_v38 = vpop.xlane.xlu0 %615 }
 0x19d   : > { %v617_v40 = vadd.f32 %v616_v38, %v611_v37 }
 0x19e   : > { %v627_v41 = vpop.xlane.xlu1 %626 }
 0x19f   : > { %619 = vst.msk [vmem:[%s994_s21] sm:$0xf] %vm606_vm2, %v617_v40  ;;  %v628_v42 = vadd.f32 %v627_v41, %v620_v39 }
 0x1a1   : > { %629 = vst.msk [vmem:[%s409_s8] sm:$0xf] %vm606_vm2, %v628_v42 }
 0x1a2 PF: > { %s18_s26 = sadd.s32 1, %s898_s26   ;;  %s1035_s24 = smov %s894_s25 }
 0x1a3   : > { %p15_p5 = scmp.ge.s32.totalorder %s18_s26, 4   ;;  %s1036_s25 = smov %s1038_s27 }
 0x1a5   :  { %17 = sbr.rel (!%p15_p5) target bundleno = 2 (0x2), region = 101 }

</bundles_post_ra>
